<compile_context>
chip_gen: v7x
topology: tpu7x:2x2x1
jax: 0.10.0
libtpu: 0.0.40
codegen_flags: <defaults>
</compile_context>

<pallas_src>
import functools

import jax
import jax.numpy as jnp
from jax.experimental import pallas as pl
from jax.experimental.pallas import tpu as pltpu

MATMUL_DTYPE = jnp.bfloat16   # f32 accumulation is always used
BN_EPS = 1e-5
LEAKY_SLOPE = 0.01
MAX_TB = 1024                 # max rows per batch tile (amortizes per-step overhead)


def _round_up(x, m):
    return (x + m - 1) // m * m


def _cdiv(a, b):
    return -(-a // b)


def _leaky_relu(x, slope=LEAKY_SLOPE):
    return jnp.where(x > 0, x, slope * x)


# --------------------------- fused MLP kernel ------------------------------- #

def actor_mlp_kernel(x_ref, w1_ref, b1_ref, w2_ref, b2_ref, w3_ref, b3_ref, o_ref):
    # BatchNorm (normalize + gamma/beta) is already folded into (w1, b1).
    h = jnp.dot(x_ref[...], w1_ref[...], preferred_element_type=jnp.float32)
    h = _leaky_relu(h + b1_ref[...])
    h = jnp.dot(h.astype(MATMUL_DTYPE), w2_ref[...],
                preferred_element_type=jnp.float32)
    h = _leaky_relu(h + b2_ref[...])
    h = jnp.dot(h.astype(MATMUL_DTYPE), w3_ref[...],
                preferred_element_type=jnp.float32)
    o_ref[...] = jnp.tanh(h + b3_ref[...]).astype(o_ref.dtype)   # bf16 writeback


# --------------------------------- wrapper ---------------------------------- #

@functools.partial(jax.jit, static_argnames=("block_rows",))
def actor_forward(state, params, block_rows=None):
    """state: [B, state_size] f32; params: dict from init_params (weights [in, out])."""
    B, S = state.shape
    F1 = params["w1"].shape[1]
    F2 = params["w2"].shape[1]
    A = params["w3"].shape[1]
    A_pad = _round_up(A, 128)
    B8 = _round_up(B, 8)

    # ---- batch tile: >=2 balanced tiles (v7x dual-TC), capped at MAX_TB rows.
    if block_rows is not None:
        TB = max(8, min(_round_up(block_rows, 8), B8))   # clamp: never exceed batch
    else:
        nb_t = max(2, _cdiv(B8, MAX_TB))
        nb_t += nb_t % 2                                 # even tile count for v7x
        TB = max(8, _round_up(_cdiv(B8, nb_t), 8))
    nb = _cdiv(B, TB)
    B_pad = nb * TB

    # ---- full-batch BatchNorm statistics (training mode, biased var) via XLA.
    # Tiny [B, S] reduction: XLA fuses it with the fold below; two-pass variance
    # avoids catastrophic cancellation.
    x32 = state.astype(jnp.float32)
    mean = jnp.mean(x32, axis=0, keepdims=True)                       # [1, S]
    var = jnp.mean(jnp.square(x32 - mean), axis=0, keepdims=True)     # [1, S]
    inv = jax.lax.rsqrt(var + BN_EPS)

    # ---- fold BN (normalize + affine) into fc1 (f32 fold, bf16 cast for MXU).
    scale = params["gamma"] * inv                                     # [1, S]
    shift = params["beta"] - mean * scale                             # [1, S]
    w1_eff = (scale.reshape(S, 1) * params["w1"]).astype(MATMUL_DTYPE)
    b1_eff = (shift @ params["w1"] + params["b1"]).astype(jnp.float32)

    w2 = params["w2"].astype(MATMUL_DTYPE)
    b2 = params["b2"].astype(jnp.float32)
    # Lane-dense output: pad action dim to 128 lanes, slice afterwards.
    w3 = jnp.pad(params["w3"], ((0, 0), (0, A_pad - A))).astype(MATMUL_DTYPE)
    b3 = jnp.pad(params["b3"], ((0, 0), (0, A_pad - A))).astype(jnp.float32)

    # ---- activations: single bf16 materialization (cast + tail pad fuse in XLA).
    x_bf = state.astype(MATMUL_DTYPE)
    if B_pad != B:
        x_bf = jnp.pad(x_bf, ((0, B_pad - B), (0, 0)))   # padded rows sliced away

    const = lambda i: (0, 0)   # weights/biases: DMA'd once, VMEM-resident across grid
    out_pad = pl.pallas_call(
        actor_mlp_kernel,
        out_shape=jax.ShapeDtypeStruct((B_pad, A_pad), MATMUL_DTYPE),  # bf16 writeback
        grid=(nb,),
        in_specs=[
            pl.BlockSpec((TB, S), lambda i: (i, 0)),     # activation tiles stream
            pl.BlockSpec((S, F1), const),
            pl.BlockSpec((1, F1), const),
            pl.BlockSpec((F1, F2), const),
            pl.BlockSpec((1, F2), const),
            pl.BlockSpec((F2, A_pad), const),
            pl.BlockSpec((1, A_pad), const),
        ],
        out_specs=pl.BlockSpec((TB, A_pad), lambda i: (i, 0)),
        compiler_params=pltpu.CompilerParams(
            dimension_semantics=("parallel",)),           # batch tiles independent
    )(x_bf, w1_eff, b1_eff, w2, b2, w3, b3)

    return out_pad[:B, :A].astype(jnp.float32)


# ---------------------------- pure-JAX reference ---------------------------- #

def actor_reference(state, params):
    x = state.astype(jnp.float32)
    mean = jnp.mean(x, axis=0, keepdims=True)
    var = jnp.mean((x - mean) ** 2, axis=0, keepdims=True)
    xn = (x - mean) * jax.lax.rsqrt(var + BN_EPS)
    xn = xn * params["gamma"] + params["beta"]
    h = xn @ params["w1"] + params["b1"]
    h = jnp.where(h > 0, h, LEAKY_SLOPE * h)
    h = h @ params["w2"] + params["b2"]
    h = jnp.where(h > 0, h, LEAKY_SLOPE * h)
    return jnp.tanh(h @ params["w3"] + params["b3"])


# ------------------------------ parameter init ------------------------------ #

def init_params(key, state_size, action_size, fc1_size=256, fc2_size=128):
    """Synthetic init mirroring the PyTorch module (weights stored [in, out])."""
    ks = jax.random.split(key, 6)
    gain = (2.0 / (1.0 + 0.01 ** 2)) ** 0.5  # calculate_gain('leaky_relu')

    def xavier_uniform(k, fan_in, fan_out):
        bound = gain * (6.0 / (fan_in + fan_out)) ** 0.5
        return jax.random.uniform(k, (fan_in, fan_out), jnp.float32, -bound, bound)

    def linear_bias(k, fan_in, fan_out):
        bound = 1.0 / (fan_in ** 0.5)
        return jax.random.uniform(k, (1, fan_out), jnp.float32, -bound, bound)

    return {
        "gamma": jnp.ones((1, state_size), jnp.float32),
        "beta": jnp.zeros((1, state_size), jnp.float32),
        "w1": xavier_uniform(ks[0], state_size, fc1_size),
        "b1": linear_bias(ks[1], state_size, fc1_size),
        "w2": xavier_uniform(ks[2], fc1_size, fc2_size),
        "b2": linear_bias(ks[3], fc1_size, fc2_size),
        "w3": jax.random.uniform(ks[4], (fc2_size, action_size), jnp.float32,
                                 -0.003, 0.003),
        "b3": linear_bias(ks[5], fc2_size, action_size),
    }


# ----------------------------------- main ----------------------------------- #

if __name__ == "__main__":
    key = jax.random.PRNGKey(0)
    k_param, k_state = jax.random.split(key)

    batch = 72          # -> TB=40, nb=2 balanced tiles (exercises the grid)
    state_size = 32
    action_size = 4
    fc1_size = 256
    fc2_size = 128

    params = init_params(k_param, state_size, action_size, fc1_size, fc2_size)
    state = jax.random.normal(k_state, (batch, state_size), jnp.float32)

    ref = actor_reference(state, params)

    # Default tiling path (2 balanced batch tiles).
    out = jax.block_until_ready(actor_forward(state, params))
    assert out.shape == (batch, action_size), out.shape
    assert out.dtype == jnp.float32
    assert bool(jnp.all(jnp.isfinite(out)))
    assert bool(jnp.all(jnp.abs(out) <= 1.0))      # tanh range
    max_err = float(jnp.max(jnp.abs(out - ref)))
    assert max_err < 5e-2, f"max |err| = {max_err}"  # bf16 matmuls + bf16 output

    # Explicit block_rows path (clamped to the batch -> single tile).
    out2 = jax.block_until_ready(actor_forward(state, params, block_rows=512))
    max_err2 = float(jnp.max(jnp.abs(out2 - ref)))
    assert out2.shape == (batch, action_size)
    assert max_err2 < 5e-2, f"max |err| = {max_err2}"

    print("KERNEL_OK")
</pallas_src>

<mosaic_0001>
module attributes {stable_mosaic.version = 11 : i64} {
  func.func @actor_mlp_kernel(%arg0: i32, %arg1: memref<40x32xbf16, #tpu.memory_space<vmem>>, %arg2: memref<32x256xbf16, #tpu.memory_space<vmem>>, %arg3: memref<1x256xf32, #tpu.memory_space<vmem>>, %arg4: memref<256x128xbf16, #tpu.memory_space<vmem>>, %arg5: memref<1x128xf32, #tpu.memory_space<vmem>>, %arg6: memref<128x128xbf16, #tpu.memory_space<vmem>>, %arg7: memref<1x128xf32, #tpu.memory_space<vmem>>, %arg8: memref<40x128xbf16, #tpu.memory_space<vmem>>) attributes {dimension_semantics = [#tpu.dimension_semantics<parallel>], iteration_bounds = array<i64: 2>, scalar_prefetch = 0 : i64, scratch_operands = 0 : i64, tpu.core_type = #tpu.core_type<tc>, window_params = [{transform_indices = @transform_0, window_bounds = array<i64: 40, 32>}, {pipeline_mode = #tpu.pipeline_mode<synchronous>, transform_indices = @transform_1, window_bounds = array<i64: 32, 256>}, {pipeline_mode = #tpu.pipeline_mode<synchronous>, transform_indices = @transform_2, window_bounds = array<i64: 1, 256>}, {pipeline_mode = #tpu.pipeline_mode<synchronous>, transform_indices = @transform_3, window_bounds = array<i64: 256, 128>}, {pipeline_mode = #tpu.pipeline_mode<synchronous>, transform_indices = @transform_4, window_bounds = array<i64: 1, 128>}, {pipeline_mode = #tpu.pipeline_mode<synchronous>, transform_indices = @transform_5, window_bounds = array<i64: 128, 128>}, {pipeline_mode = #tpu.pipeline_mode<synchronous>, transform_indices = @transform_6, window_bounds = array<i64: 1, 128>}, {transform_indices = @transform_7, window_bounds = array<i64: 40, 128>}]} {
    %c0 = arith.constant 0 : index
    %c0_0 = arith.constant 0 : index
    %0 = vector.load %arg1[%c0, %c0_0] : memref<40x32xbf16, #tpu.memory_space<vmem>>, vector<40x32xbf16>
    %c0_1 = arith.constant 0 : index
    %c0_2 = arith.constant 0 : index
    %1 = vector.load %arg2[%c0_1, %c0_2] : memref<32x256xbf16, #tpu.memory_space<vmem>>, vector<32x256xbf16>
    %cst = arith.constant dense<0.000000e+00> : vector<40x256xf32>
    %2 = tpu.matmul %0, %1, %cst {dimension_numbers = #tpu.dot_dimension_numbers<[1], [0], [0], [1], [0, 0, 1, 1], [], []>} : vector<40x32xbf16>, vector<32x256xbf16>, vector<40x256xf32> -> vector<40x256xf32>
    %c0_3 = arith.constant 0 : index
    %c0_4 = arith.constant 0 : index
    %3 = vector.load %arg3[%c0_3, %c0_4] : memref<1x256xf32, #tpu.memory_space<vmem>>, vector<1x256xf32>
    %4 = vector.broadcast %3 : vector<1x256xf32> to vector<40x256xf32>
    %5 = arith.addf %2, %4 : vector<40x256xf32>
    %cst_5 = arith.constant 0.000000e+00 : f32
    %6 = vector.broadcast %cst_5 : f32 to vector<40x256xf32>
    %7 = arith.cmpf ogt, %5, %6 : vector<40x256xf32>
    %cst_6 = arith.constant 0.00999999977 : f32
    %8 = vector.broadcast %cst_6 : f32 to vector<40x256xf32>
    %9 = arith.mulf %8, %5 : vector<40x256xf32>
    %10 = arith.select %7, %5, %9 : vector<40x256xi1>, vector<40x256xf32>
    %11 = arith.truncf %10 : vector<40x256xf32> to vector<40x256xbf16>
    %c0_7 = arith.constant 0 : index
    %c0_8 = arith.constant 0 : index
    %12 = vector.load %arg4[%c0_7, %c0_8] : memref<256x128xbf16, #tpu.memory_space<vmem>>, vector<256x128xbf16>
    %cst_9 = arith.constant dense<0.000000e+00> : vector<40x128xf32>
    %13 = tpu.matmul %11, %12, %cst_9 {dimension_numbers = #tpu.dot_dimension_numbers<[1], [0], [0], [1], [0, 0, 1, 1], [], []>} : vector<40x256xbf16>, vector<256x128xbf16>, vector<40x128xf32> -> vector<40x128xf32>
    %c0_10 = arith.constant 0 : index
    %c0_11 = arith.constant 0 : index
    %14 = vector.load %arg5[%c0_10, %c0_11] : memref<1x128xf32, #tpu.memory_space<vmem>>, vector<1x128xf32>
    %15 = vector.broadcast %14 : vector<1x128xf32> to vector<40x128xf32>
    %16 = arith.addf %13, %15 : vector<40x128xf32>
    %cst_12 = arith.constant 0.000000e+00 : f32
    %17 = vector.broadcast %cst_12 : f32 to vector<40x128xf32>
    %18 = arith.cmpf ogt, %16, %17 : vector<40x128xf32>
    %cst_13 = arith.constant 0.00999999977 : f32
    %19 = vector.broadcast %cst_13 : f32 to vector<40x128xf32>
    %20 = arith.mulf %19, %16 : vector<40x128xf32>
    %21 = arith.select %18, %16, %20 : vector<40x128xi1>, vector<40x128xf32>
    %22 = arith.truncf %21 : vector<40x128xf32> to vector<40x128xbf16>
    %c0_14 = arith.constant 0 : index
    %c0_15 = arith.constant 0 : index
    %23 = vector.load %arg6[%c0_14, %c0_15] : memref<128x128xbf16, #tpu.memory_space<vmem>>, vector<128x128xbf16>
    %cst_16 = arith.constant dense<0.000000e+00> : vector<40x128xf32>
    %24 = tpu.matmul %22, %23, %cst_16 {dimension_numbers = #tpu.dot_dimension_numbers<[1], [0], [0], [1], [0, 0, 1, 1], [], []>} : vector<40x128xbf16>, vector<128x128xbf16>, vector<40x128xf32> -> vector<40x128xf32>
    %c0_17 = arith.constant 0 : index
    %c0_18 = arith.constant 0 : index
    %25 = vector.load %arg7[%c0_17, %c0_18] : memref<1x128xf32, #tpu.memory_space<vmem>>, vector<1x128xf32>
    %26 = vector.broadcast %25 : vector<1x128xf32> to vector<40x128xf32>
    %27 = arith.addf %24, %26 : vector<40x128xf32>
    %28 = math.tanh %27 : vector<40x128xf32>
    %29 = arith.truncf %28 : vector<40x128xf32> to vector<40x128xbf16>
    %c0_19 = arith.constant 0 : index
    %c0_20 = arith.constant 0 : index
    %30 = vector.load %arg8[%c0_19, %c0_20] : memref<40x128xbf16, #tpu.memory_space<vmem>>, vector<40x128xbf16>
    tpu.vector_store %arg8[%c0_19, %c0_20], %29 {strides = array<i32>} : memref<40x128xbf16, #tpu.memory_space<vmem>>, vector<40x128xbf16>,
    return
  }
  func.func @transform_0(%arg0: i32) -> (i32, i32) {
    %c0_i32 = arith.constant 0 : i32
    %c0_i32_0 = arith.constant 0 : i32
    return %arg0, %c0_i32 : i32, i32
  }
  func.func @transform_1(%arg0: i32) -> (i32, i32) {
    %c0_i32 = arith.constant 0 : i32
    %c0_i32_0 = arith.constant 0 : i32
    %c0_i32_1 = arith.constant 0 : i32
    return %c0_i32, %c0_i32_0 : i32, i32
  }
  func.func @transform_2(%arg0: i32) -> (i32, i32) {
    %c0_i32 = arith.constant 0 : i32
    %c0_i32_0 = arith.constant 0 : i32
    %c0_i32_1 = arith.constant 0 : i32
    return %c0_i32, %c0_i32_0 : i32, i32
  }
  func.func @transform_3(%arg0: i32) -> (i32, i32) {
    %c0_i32 = arith.constant 0 : i32
    %c0_i32_0 = arith.constant 0 : i32
    %c0_i32_1 = arith.constant 0 : i32
    return %c0_i32, %c0_i32_0 : i32, i32
  }
  func.func @transform_4(%arg0: i32) -> (i32, i32) {
    %c0_i32 = arith.constant 0 : i32
    %c0_i32_0 = arith.constant 0 : i32
    %c0_i32_1 = arith.constant 0 : i32
    return %c0_i32, %c0_i32_0 : i32, i32
  }
  func.func @transform_5(%arg0: i32) -> (i32, i32) {
    %c0_i32 = arith.constant 0 : i32
    %c0_i32_0 = arith.constant 0 : i32
    %c0_i32_1 = arith.constant 0 : i32
    return %c0_i32, %c0_i32_0 : i32, i32
  }
  func.func @transform_6(%arg0: i32) -> (i32, i32) {
    %c0_i32 = arith.constant 0 : i32
    %c0_i32_0 = arith.constant 0 : i32
    %c0_i32_1 = arith.constant 0 : i32
    return %c0_i32, %c0_i32_0 : i32, i32
  }
  func.func @transform_7(%arg0: i32) -> (i32, i32) {
    %c0_i32 = arith.constant 0 : i32
    %c0_i32_0 = arith.constant 0 : i32
    return %arg0, %c0_i32 : i32, i32
  }
}

</mosaic_0001>

<bundles_post_ra>
// kernel: actor_forward.1
= control target key start
LH: loop header
LB: loop body
LE: loop exit
PB: predicated region body
PF: predicated region fallthrough
CT: control target
= control target key end

     0   :  { %s1111_s24 = smov 0   ;;  %s1245_s0 = inlined_call_operand.vmem [shape: bf16[80,32], index: 0, kind: input, shape index: {}]   ;;  %s1246_s1 = inlined_call_operand.vmem [shape: bf16[32,256], index: 1, kind: input, shape index: {}]   ;;  %s1247_s2 = inlined_call_operand.vmem [shape: f32[1,256], index: 2, kind: input, shape index: {}]   ;;  %s1248_s3 = inlined_call_operand.vmem [shape: bf16[256,128], index: 3, kind: input, shape index: {}]   ;;  %s1249_s4 = inlined_call_operand.vmem [shape: f32[1,128], index: 4, kind: input, shape index: {}]   ;;  %s1250_s5 = inlined_call_operand.vmem [shape: bf16[128,128], index: 5, kind: input, shape index: {}]   ;;  %s1251_s6 = inlined_call_operand.vmem [shape: f32[1,128], index: 6, kind: input, shape index: {}]   ;;  %s1252_s7 = inlined_call_operand.vmem [shape: bf16[80,128], index: 7, kind: output, shape index: {}]  }
   0x1 LB: > { %s867_s25 = sadd.s32 4294967295, %s1066_s24   ;;  %p871_p0 = scmp.ge.s32.totalorder %s1066_s24, 1  ;;  %s1066_s24 = sphi %s1111_s24, %s17_s24  }
   0x2   : > { %p238_p1 = scmp.lt.s32.totalorder %s1066_s24, 3 }
   0x4   : > { %p239_p2 = pnand %p871_p0, %p238_p1 }
   0x5   : > { %v1017_v0 = vld [vmem:[%s1246_s1 + $0x4] ss:$8 sps:$4 sm:$0xff] (!%p239_p2)   ;;  %s270_s28 = smul.u32 (!%p239_p2), 5, %s867_s25  ;;  %v1019_v1 = vld [vmem:[%s1246_s1] ss:$8 sps:$4 sm:$0xff] (!%p239_p2)   ;;  %v1068_v2 = vmov (!%p239_p2), 0   ;;  %v294_v30 = vlaneseq (!%p239_p2) }
   0x6   : > { %242 = sbr.rel (%p239_p2) target bundleno = 708 (0x2c4), region = 48  ;;  %379 = vmatprep.mubr.bf16.mxu0 (!%p239_p2), %v1068_v2  ;;  %347 = vmatprep.subr.bf16.mxu0 (!%p239_p2), %v1017_v0  ;;  %v1020_v3 = vld [vmem:[%s1246_s1 + $0x14] ss:$8 sps:$4 sm:$0xff] (!%p239_p2)   ;;  %v1022_v4 = vld [vmem:[%s1246_s1 + $0x10] ss:$8 sps:$4 sm:$0xff] (!%p239_p2)   ;;  %v1026_v5 = vld [vmem:[%s1248_s3 + $0x40] sm:$0xff] (!%p239_p2)  }
   0x7   : > { %p271_p3 = scmp.lt.s32.totalorder (!%p239_p2), %s270_s28, 9  ;;  %348 = vmatpush1.bf16.msra.mxu0 (!%p239_p2), %v1019_v1  ;;  %933 = vmatprep.subr.bf16.mxu1 (!%p239_p2), %v1026_v5  ;;  %v1027_v6 = vld [vmem:[%s1248_s3] sm:$0xff] (!%p239_p2)   ;;  %v1028_v7 = vld [vmem:[%s1248_s3 + $0x48] sm:$0xff] (!%p239_p2)   ;;  %vm337_vm0 = vcmask (!%p239_p2), 261120   ;;  %v1030_v9 = vld [vmem:[%s1248_s3 + $0x50] sm:$0xff] (!%p239_p2)   ;;  %v1069_v25 = vmov (!%p239_p2), 0.0  }
   0x8   : > { %349 = vmatprep.subr.bf16.mxu0 (!%p239_p2), %v1020_v3  ;;  %934 = vmatpush3.bf16.msra.mxu1 (!%p239_p2), %v1027_v6  ;;  %v1029_v8 = vld [vmem:[%s1248_s3 + $0x8] sm:$0xff] (!%p239_p2)   ;;  %v1031_v11 = vld [vmem:[%s1248_s3 + $0x10] sm:$0xff] (!%p239_p2)   ;;  %v1032_v12 = vld [vmem:[%s1248_s3 + $0x58] sm:$0xff] (!%p239_p2)   ;;  %v295_v31 = vshrl.u32 (!%p239_p2), %v294_v30, 7  ;;  %vm1070_vm11 = vmmov (!%p239_p2), 0  }
   0x9   : > { %935 = vmatprep.subr.bf16.mxu1 (!%p239_p2), %v1028_v7  ;;  %v1033_v14 = vld [vmem:[%s1248_s3 + $0x18] sm:$0xff] (!%p239_p2)   ;;  %v1034_v15 = vld [vmem:[%s1248_s3 + $0x60] sm:$0xff] (!%p239_p2)   ;;  %v1036_v18 = vld [vmem:[%s1248_s3 + $0x68] sm:$0xff] (!%p239_p2)  }
   0xa   : > { %v1035_v16 = vld [vmem:[%s1248_s3 + $0x20] sm:$0xff] (!%p239_p2)   ;;  %v1037_v19 = vld [vmem:[%s1248_s3 + $0x28] sm:$0xff] (!%p239_p2)   ;;  %v1038_v20 = vld [vmem:[%s1248_s3 + $0x70] sm:$0xff] (!%p239_p2)   ;;  %v296_v32 = vsub.s32 (!%p239_p2), 0, %v295_v31  ;;  %v300_v34 = vsub.s32 (!%p239_p2), 1, %v295_v31 }
   0xb   : > { %350 = vmatpush1.bf16.msra.mxu0 (!%p239_p2), %v1022_v4  ;;  %v1039_v21 = vld [vmem:[%s1248_s3 + $0x30] sm:$0xff] (!%p239_p2)   ;;  %v1040_v22 = vld [vmem:[%s1248_s3 + $0x78] sm:$0xff] (!%p239_p2)   ;;  %v1042_v24 = vld [vmem:[%s1250_s5] sm:$0xff] (!%p239_p2)  }
   0xc   : > { %936 = vmatpush3.bf16.msra.mxu1 (!%p239_p2), %v1029_v8  ;;  %v1041_v23 = vld [vmem:[%s1248_s3 + $0x38] sm:$0xff] (!%p239_p2)   ;;  %978 = vmatprep.subr.bf16.mxu0 (!%p239_p2), %v1069_v25  ;;  %v1043_v26 = vld [vmem:[%s1250_s5 + $0x8] sm:$0xff] (!%p239_p2)   ;;  %v1044_v27 = vld [vmem:[%s1250_s5 + $0x10] sm:$0xff] (!%p239_p2)  }
   0xd   : > { %s1254_s28 = smov (!%p271_p3, %s270_s28), 9  ;;  %937 = vmatprep.subr.bf16.mxu1 %v1030_v9  ;;  %v1045_v28 = vld [vmem:[%s1250_s5 + $0x18] sm:$0xff]   ;;  %v1046_v29 = vld [vmem:[%s1250_s5 + $0x20] sm:$0xff]  }
   0xe   : > { %s872_s18 = sshll.u32 %s1254_s28, 2  ;;  %v292_v33 = vld [vmem:[%s1247_s2] sm:$0x3] }
   0xf   : > { %s274_s23 = scalar_lea.vmem %s1245_s0, %s872_s18  ;;  %v297_v35 = vrot.slane %v292_v33, %v296_v32  ;;  %v301_v36 = vrot.slane %v292_v33, %v300_v34  ;;  %s280_s11 = scalar_lea.vmem %s1252_s7, %s872_s18 }
  0x10   : > { %v1023_v10 = vld [vmem:[%s274_s23] sm:$0xff]   ;;  %v1024_v13 = vld [vmem:[%s274_s23 + $0x8] sm:$0xff]   ;;  %938 = vmatpush3.bf16.msra.mxu1 %v1031_v11  ;;  %v1025_v17 = vld [vmem:[%s274_s23 + $0x10] ss:$0 sps:$4 sm:$0xff]  }
  0x11   : > { %881 = vmatmul.mubr.msk.bf16.vlgmr.msra.gmra.mrb[0].mxu0 %vm337_vm0, %v1023_v10  ;;  %939 = vmatprep.subr.bf16.mxu1 %v1032_v12 }
  0x12   : > { %389 = vmatprep.mubr.bf16.mxu0 %v1068_v2  ;;  %979 = vmatpush3.bf16.msra.mxu0 %v1042_v24 }
  0x13   : > { %980 = vmatprep.subr.bf16.mxu0 %v1069_v25 }
  0x14   : > { %940 = vmatpush3.bf16.msra.mxu1 %v1033_v14 }
  0x15   : > { %941 = vmatprep.subr.bf16.mxu1 %v1034_v15 }
  0x16   : > { %981 = vmatpush3.bf16.msra.mxu0 %v1043_v26  ;;  %v884_v26 = vld [vmem:[%s1249_s4] ss:$0 sm:$0xff] }
  0x17   : > { %982 = vmatprep.subr.bf16.mxu0 %v1069_v25 }
  0x18   : > { %942 = vmatpush3.bf16.msra.mxu1 %v1035_v16 }
  0x19   : > { %882 = vmatmul.mubr.msk.bf16.gmra.mrb[4].mxu0 %vm337_vm0, %v1024_v13  ;;  %943 = vmatprep.subr.bf16.mxu1 %v1036_v18 }
  0x1a   : > { %399 = vmatprep.mubr.bf16.mxu0 %v1068_v2  ;;  %983 = vmatpush3.bf16.msra.mxu0 %v1044_v27 }
  0x1b   : > { %984 = vmatprep.subr.bf16.mxu0 %v1069_v25 }
  0x1c   : > { %944 = vmatpush3.bf16.msra.mxu1 %v1037_v19 }
  0x1d   : > { %945 = vmatprep.subr.bf16.mxu1 %v1038_v20 }
  0x1e   : > { %985 = vmatpush3.bf16.msra.mxu0 %v1045_v28 }
  0x1f   : > { %986 = vmatprep.subr.bf16.mxu0 %v1069_v25 }
  0x20   : > { %946 = vmatpush3.bf16.msra.mxu1 %v1039_v21  ;;  %v1047_v21 = vld [vmem:[%s1250_s5 + $0x28] sm:$0xff]  }
  0x21   : > { %883 = vmatmul.mubr.msk.bf16.gmra.mrb[8].mxu0 %vm337_vm0, %v1025_v17  ;;  %947 = vmatprep.subr.bf16.mxu1 %v1040_v22  ;;  %v1048_v22 = vld [vmem:[%s1250_s5 + $0x30] sm:$0xff]  }
  0x22   : > { %987 = vmatpush3.bf16.msra.mxu0 %v1046_v29  ;;  %994 = vmatprep.mubr.msk.bf16.mxu0 %vm1070_vm11, %v1069_v25 }
  0x23   : > { %988 = vmatprep.subr.bf16.mxu0 %v1069_v25 }
  0x24   : > { %948 = vmatpush3.bf16.msra.mxu1 %v1041_v23  ;;  %v1049_v23 = vld [vmem:[%s1250_s5 + $0x38] sm:$0xff]  }
  0x26   : > { %989 = vmatpush3.bf16.msra.mxu0 %v1047_v21 }
  0x27   : > { %990 = vmatprep.subr.bf16.mxu0 %v1069_v25 }
  0x2a   : > { %991 = vmatpush3.bf16.msra.mxu0 %v1048_v22 }
  0x2b   : > { %992 = vmatprep.subr.bf16.mxu0 %v1069_v25 }
  0x2e   : > { %993 = vmatpush3.bf16.msra.mxu0 %v1049_v23 }
  0xe4   : > { %v381_v37 = vpop.f32.mrb[0].mxu0 }
  0xe5   : > { %v382_v38 = vadd.f32 %v381_v37, %v297_v35  ;;  %v383_v39 = vpop.f32.mrb[1].mxu0 }
  0xe6   : > { %v384_v40 = vadd.f32 %v383_v39, %v301_v36  ;;  %v385_v41 = vpop.f32.mrb[2].mxu0 }
  0xe7   : > { %v418_v42 = vmul.f32 0.01, %v382_v38  ;;  %v386_v43 = vadd.f32 %v385_v41, %v297_v35  ;;  %v387_v44 = vpop.f32.mrb[3].mxu0  ;;  %vm408_vm1 = vcmp.gt.f32.partialorder %v382_v38, 0.0 }
  0xe8   : > { %v419_v45 = vmul.f32 0.01, %v384_v40  ;;  %v388_v46 = vadd.f32 %v387_v44, %v301_v36  ;;  %vm409_vm3 = vcmp.gt.f32.partialorder %v384_v40, 0.0 }
  0xe9   : > { %vm410_vm2 = vcmp.gt.f32.partialorder %v386_v43, 0.0  ;;  %v420_v47 = vmul.f32 0.01, %v386_v43  ;;  %v428_v49 = vsel %vm408_vm1, %v382_v38, %v418_v42 }
  0xea   : > { %v421_v48 = vmul.f32 0.01, %v388_v46  ;;  %vm411_vm4 = vcmp.gt.f32.partialorder %v388_v46, 0.0  ;;  %v429_v52 = vsel %vm409_vm3, %v384_v40, %v419_v45 }
  0xeb   : > { %v430_v50 = vsel %vm410_vm2, %v386_v43, %v420_v47 }
  0xec   : > { %v391_v51 = vpop.f32.mrb[4].mxu0  ;;  %v431_v53 = vsel %vm411_vm4, %v388_v46, %v421_v48  ;;  %v438_v54 = vpack.c.bf16 %v430_v50, %v428_v49 }
  0xed   : > { %v392_v55 = vadd.f32 %v391_v51, %v297_v35  ;;  %v393_v56 = vpop.f32.mrb[5].mxu0  ;;  %v439_v57 = vpack.c.bf16 %v431_v53, %v429_v52 }
  0xee   : > { %v394_v58 = vadd.f32 %v393_v56, %v301_v36  ;;  %v395_v59 = vpop.f32.mrb[6].mxu0 }
  0xef   : > { %v422_v60 = vmul.f32 0.01, %v392_v55  ;;  %v396_v61 = vadd.f32 %v395_v59, %v297_v35  ;;  %v397_v62 = vpop.f32.mrb[7].mxu0  ;;  %611 = vmatprep.mubr.bf16.mxu1 %v439_v57  ;;  %vm412_vm5 = vcmp.gt.f32.partialorder %v392_v55, 0.0 }
  0xf0   : > { %v423_v63 = vmul.f32 0.01, %v394_v58  ;;  %v398_v0 = vadd.f32 %v397_v62, %v301_v36  ;;  %612 = vmatmul.mubr.bf16.vlgmr.msra.gmra.mrb[0].mxu1 %v438_v54  ;;  %vm413_vm6 = vcmp.gt.f32.partialorder %v394_v58, 0.0 }
  0xf1   : > { %vm414_vm7 = vcmp.gt.f32.partialorder %v396_v61, 0.0  ;;  %v424_v1 = vmul.f32 0.01, %v396_v61  ;;  %v432_v3 = vsel %vm412_vm5, %v392_v55, %v422_v60 }
  0xf2   : > { %vm415_vm8 = vcmp.gt.f32.partialorder %v398_v0, 0.0  ;;  %v425_v2 = vmul.f32 0.01, %v398_v0  ;;  %v433_v6 = vsel %vm413_vm6, %v394_v58, %v423_v63 }
  0xf3   : > { %v434_v4 = vsel %vm414_vm7, %v396_v61, %v424_v1  ;;  %v901_v61 = vld [vmem:[%s1251_s6] ss:$0 sm:$0xff] }
  0xf4   : > { %v401_v5 = vpop.f32.mrb[8].mxu0  ;;  %v435_v7 = vsel %vm415_vm8, %v398_v0, %v425_v2  ;;  %v440_v8 = vpack.c.bf16 %v434_v4, %v432_v3 }
  0xf5   : > { %v402_v9 = vadd.f32 %v401_v5, %v297_v35  ;;  %v403_v10 = vpop.f32.mrb[9].mxu0  ;;  %v441_v11 = vpack.c.bf16 %v435_v7, %v433_v6 }
  0xf6   : > { %v404_v12 = vadd.f32 %v403_v10, %v301_v36  ;;  %v405_v13 = vpop.f32.mrb[10].mxu0 }
  0xf7   : > { %v426_v14 = vmul.f32 0.01, %v402_v9  ;;  %619 = vmatprep.mubr.bf16.mxu1 %v441_v11  ;;  %v406_v15 = vpop.f32.mrb[11].mxu0  ;;  %vm416_vm9 = vcmp.gt.f32.partialorder %v402_v9, 0.0 }
  0xf8   : > { %vm417_vm10 = vcmp.gt.f32.partialorder %v404_v12, 0.0  ;;  %v427_v16 = vmul.f32 0.01, %v404_v12  ;;  %620 = vmatmul.mubr.bf16.gmra.mrb[4].mxu1 %v440_v8 }
  0xf9   : > { %v436_v19 = vsel %vm416_vm9, %v402_v9, %v426_v14 }
  0xfa   : > { %v437_v17 = vsel %vm417_vm10, %v404_v12, %v427_v16  ;;  %v442_v20 = vpack.c.bf16 %v436_v19, %v436_v19 }
  0xfb   : > { %v443_v18 = vpack.c.bf16 %v437_v17, %v437_v17 }
  0xfd   : > { %627 = vmatprep.mubr.bf16.mxu1 %v443_v18 }
 0x100   : > { %628 = vmatmul.mubr.bf16.gmra.mrb[8].mxu1 %v442_v20 }
 0x1c3   : > { %v949_v24 = vpop.f32.mrb[0].mxu1 }
 0x1c4   : > { %v950_v27 = vpop.f32.mrb[1].mxu1 }
 0x1c5   : > { %v951_v28 = vadd.f32 %v950_v27, %v949_v24  ;;  %v952_v29 = vpop.f32.mrb[2].mxu1 }
 0x1c6   : > { %v953_v30 = vpop.f32.mrb[3].mxu1 }
 0x1c7   : > { %v614_v31 = vadd.f32 %v951_v28, %v884_v26  ;;  %v954_v32 = vadd.f32 %v953_v30, %v952_v29 }
 0x1c9   : > { %v640_v33 = vmul.f32 0.01, %v614_v31  ;;  %v617_v34 = vadd.f32 %v954_v32, %v884_v26  ;;  %vm635_vm12 = vcmp.gt.f32.partialorder %v614_v31, 0.0 }
 0x1cb   : > { %vm636_vm13 = vcmp.gt.f32.partialorder %v617_v34, 0.0  ;;  %v641_v35 = vmul.f32 0.01, %v617_v34  ;;  %v955_v36 = vpop.f32.mrb[4].mxu1  ;;  %v645_v38 = vsel %vm635_vm12, %v614_v31, %v640_v33 }
 0x1cc   : > { %v956_v37 = vpop.f32.mrb[5].mxu1 }
 0x1cd   : > { %v646_v39 = vsel %vm636_vm13, %v617_v34, %v641_v35  ;;  %v957_v40 = vadd.f32 %v956_v37, %v955_v36  ;;  %v958_v41 = vpop.f32.mrb[6].mxu1 }
 0x1ce   : > { %v650_v42 = vpack.c.bf16 %v646_v39, %v645_v38  ;;  %v959_v43 = vpop.f32.mrb[7].mxu1 }
 0x1cf   : > { %v622_v44 = vadd.f32 %v957_v40, %v884_v26  ;;  %v960_v45 = vadd.f32 %v959_v43, %v958_v41 }
 0x1d0   : > { %995 = vmatmul.mubr.bf16.vlgmr.msra.gmra.mrb[12].mxu0 %v650_v42 }
 0x1d1   : > { %v642_v46 = vmul.f32 0.01, %v622_v44  ;;  %v625_v47 = vadd.f32 %v960_v45, %v884_v26  ;;  %998 = vmatprep.mubr.msk.bf16.mxu0 %vm1070_vm11, %v1069_v25  ;;  %vm637_vm14 = vcmp.gt.f32.partialorder %v622_v44, 0.0 }
 0x1d3   : > { %vm638_vm15 = vcmp.gt.f32.partialorder %v625_v47, 0.0  ;;  %v643_v48 = vmul.f32 0.01, %v625_v47  ;;  %v961_v49 = vpop.f32.mrb[8].mxu1  ;;  %v647_v53 = vsel %vm637_vm14, %v622_v44, %v642_v46 }
 0x1d4   : > { %v962_v50 = vpop.f32.mrb[9].mxu1 }
 0x1d5   : > { %v963_v51 = vadd.f32 %v962_v50, %v961_v49  ;;  %v964_v52 = vpop.f32.mrb[10].mxu1  ;;  %v648_v54 = vsel %vm638_vm15, %v625_v47, %v643_v48 }
 0x1d6   : > { %v965_v55 = vpop.f32.mrb[11].mxu1  ;;  %v651_v56 = vpack.c.bf16 %v648_v54, %v647_v53 }
 0x1d7   : > { %v630_v57 = vadd.f32 %v963_v51, %v884_v26 }
 0x1d8   : > { %999 = vmatmul.mubr.bf16.gmra.mrb[16].mxu0 %v651_v56 }
 0x1d9   : > { %v644_v58 = vmul.f32 0.01, %v630_v57  ;;  %1002 = vmatprep.mubr.msk.bf16.mxu0 %vm1070_vm11, %v1069_v25  ;;  %vm639_vm0 = vcmp.gt.f32.partialorder %v630_v57, 0.0 }
 0x1db   : > { %v649_v59 = vsel %vm639_vm0, %v630_v57, %v644_v58 }
 0x1dc   : > { %v652_v60 = vpack.c.bf16 %v649_v59, %v649_v59 }
 0x1e0   : > { %1003 = vmatmul.mubr.bf16.gmra.mrb[20].mxu0 %v652_v60 }
 0x2a3   : > { %v758_v62 = vpop.f32.mrb[12].mxu0 }
 0x2a4   : > { %v759_v63 = vadd.f32 %v901_v61, %v758_v62  ;;  %v996_v0 = vpop.f32.mrb[13].mxu0 }
 0x2a5   : > { %v761_v1 = vpop.f32.mrb[14].mxu0 }
 0x2a6   : > { %v762_v2 = vadd.f32 %v901_v61, %v761_v1  ;;  %v997_v3 = vpop.f32.mrb[15].mxu0  ;;  %1050 = vtanh.f32 %v759_v63 }
 0x2a8   : > { %1052 = vtanh.f32 %v762_v2 }
 0x2ab   : > { %v766_v4 = vpop.f32.mrb[16].mxu0 }
 0x2ac   : > { %v767_v5 = vadd.f32 %v901_v61, %v766_v4  ;;  %v1000_v25 = vpop.f32.mrb[17].mxu0 }
 0x2ad   : > { %v769_v6 = vpop.f32.mrb[18].mxu0 }
 0x2ae   : > { %v770_v7 = vadd.f32 %v901_v61, %v769_v6  ;;  %v1001_v8 = vpop.f32.mrb[19].mxu0  ;;  %1054 = vtanh.f32 %v767_v5 }
 0x2b0   : > { %1056 = vtanh.f32 %v770_v7  ;;  %v1051_v9 = vpop.eup %1050 }
 0x2b2   : > { %v1053_v10 = vpop.eup %1052 }
 0x2b3   : > { %v925_v11 = vpack.c.bf16 %v1053_v10, %v1051_v9  ;;  %v774_v12 = vpop.f32.mrb[20].mxu0 }
 0x2b4   : > { %v775_v13 = vadd.f32 %v901_v61, %v774_v12  ;;  %v1004_v14 = vpop.f32.mrb[21].mxu0 }
 0x2b5   : > { %926 = vst [vmem:[%s280_s11] sm:$0xff] %v925_v11   ;;  %v777_v15 = vpop.f32.mrb[22].mxu0 }
 0x2b6   : > { %1058 = vtanh.f32 %v775_v13  ;;  %v1005_v16 = vpop.f32.mrb[23].mxu0 }
 0x2b8   : > { %v1055_v17 = vpop.eup %1054 }
 0x2ba   : > { %v1057_v18 = vpop.eup %1056 }
 0x2bb   : > { %v930_v19 = vpack.c.bf16 %v1057_v18, %v1055_v17 }
 0x2bd   : > { %932 = vst [vmem:[%s280_s11 + $0x8] sm:$0xff] %v930_v19  }
 0x2c0   : > { %v1059_v20 = vpop.eup %1058 }
 0x2c1   : > { %v921_v21 = vpack.c.bf16 %v1059_v20, %v1059_v20 }
 0x2c3   : > { %810 = vst [vmem:[%s280_s11 + $0x10] sm:$0xf] %v921_v21 }
 0x2c4 PF: > { %s17_s24 = sadd.s32 1, %s1066_s24  }
 0x2c5   : > { %p14_p4 = scmp.ge.s32.totalorder %s17_s24, 4  }
 0x2c7   :  { %16 = sbr.rel (!%p14_p4) target bundleno = 1 (0x1), region = 78 }

</bundles_post_ra>
